<compile_context>
chip_gen: v5e
topology: v5e:2x2
jax: 0.10.0
libtpu: 0.0.40
codegen_flags: <defaults>
</compile_context>

<pallas_src>
import jax
import jax.numpy as jnp
from jax.experimental import pallas as pl
from jax.experimental.pallas import tpu as pltpu


def _round_up(x, m):
    return (x + m - 1) // m * m


# VMEM working-set budget for tile selection (leaves headroom on v7x's 64 MiB;
# v5e/v6e have 128 MiB physical).
_VMEM_BUDGET = 48 * 1024 * 1024


def _mosaic_params(semantics, block_bytes):
    """CompilerParams with an explicit scoped-VMEM limit derived from blocks."""
    limit = int(min(max(block_bytes + (4 << 20), 32 << 20), 56 << 20))
    return pltpu.CompilerParams(dimension_semantics=semantics,
                                vmem_limit_bytes=limit)


# ----------------- tiled matmul(+bias) kernels: input proj / decoder ---------
def _matmul_bias_kernel(x_ref, w_ref, b_ref, o_ref):
    acc = jnp.dot(x_ref[...], w_ref[...], preferred_element_type=jnp.float32)
    o_ref[...] = (acc + b_ref[...]).astype(o_ref.dtype)


def _matmul2_bias_kernel(x1_ref, x2_ref, w1_ref, w2_ref, b_ref, o_ref):
    acc = (jnp.dot(x1_ref[...], w1_ref[...], preferred_element_type=jnp.float32)
           + jnp.dot(x2_ref[...], w2_ref[...], preferred_element_type=jnp.float32))
    o_ref[...] = (acc + b_ref[...]).astype(o_ref.dtype)


def _select_tiles(N, K, V, out_bytes, tv_max=512):
    """Pick (tn, tv) so the double-buffered working set fits the VMEM budget.

    Prefers a single N-tile (no dead padded rows, weight streamed once); falls
    back to roughly equal N tiles with N as the innermost grid axis.
    """
    tv = min(tv_max, _round_up(V, 128))

    def ws(tn):  # x + w + b + out tiles, double buffered (bf16 inputs)
        return 2 * (tn * K * 2 + K * tv * 2 + tv * 4 + tn * tv * out_bytes)

    tn_full = _round_up(N, 16)
    if ws(tn_full) <= _VMEM_BUDGET:
        tn = tn_full
    else:
        n_tiles = -(-tn_full // 256)
        tn = _round_up(-(-N // n_tiles), 16)
    return tn, tv, ws(tn)


def matmul_bias(x, w_t, b, out_dtype=jnp.float32):
    """x:(N,K) bf16 @ w_t:(K,V) bf16 + b:(1,V) f32 -> (N,V) out_dtype."""
    N, K = x.shape
    V = w_t.shape[1]
    tn, tv, ws_bytes = _select_tiles(N, K, V, jnp.dtype(out_dtype).itemsize)
    Np, Vp = _round_up(N, tn), _round_up(V, tv)
    if Np != N:
        x = jnp.pad(x, ((0, Np - N), (0, 0)))
    if Vp != V:
        w_t = jnp.pad(w_t, ((0, 0), (0, Vp - V)))
        b = jnp.pad(b, ((0, 0), (0, Vp - V)))
    # N is the innermost grid axis: the weight tile index is constant across
    # consecutive steps, so the big weight is not re-fetched from HBM per N-tile.
    out = pl.pallas_call(
        _matmul_bias_kernel,
        out_shape=jax.ShapeDtypeStruct((Np, Vp), out_dtype),
        grid=(Vp // tv, Np // tn),
        in_specs=[
            pl.BlockSpec((tn, K), lambda j, i: (i, 0)),
            pl.BlockSpec((K, tv), lambda j, i: (0, j)),
            pl.BlockSpec((1, tv), lambda j, i: (0, j)),
        ],
        out_specs=pl.BlockSpec((tn, tv), lambda j, i: (i, j)),
        compiler_params=_mosaic_params(("parallel", "parallel"), ws_bytes),
    )(x, w_t, b)
    return out[:N, :V]


def matmul2_bias(x1, x2, w1_t, w2_t, b, out_dtype=jnp.bfloat16):
    """x1@w1_t + x2@w2_t + b — fused layer-0 input projection (no HBM concat)."""
    N, K1 = x1.shape
    K2 = x2.shape[1]
    V = w1_t.shape[1]
    tn, tv, ws_bytes = _select_tiles(N, K1 + K2, V, jnp.dtype(out_dtype).itemsize)
    Np, Vp = _round_up(N, tn), _round_up(V, tv)
    if Np != N:
        x1 = jnp.pad(x1, ((0, Np - N), (0, 0)))
        x2 = jnp.pad(x2, ((0, Np - N), (0, 0)))
    if Vp != V:
        w1_t = jnp.pad(w1_t, ((0, 0), (0, Vp - V)))
        w2_t = jnp.pad(w2_t, ((0, 0), (0, Vp - V)))
        b = jnp.pad(b, ((0, 0), (0, Vp - V)))
    out = pl.pallas_call(
        _matmul2_bias_kernel,
        out_shape=jax.ShapeDtypeStruct((Np, Vp), out_dtype),
        grid=(Vp // tv, Np // tn),
        in_specs=[
            pl.BlockSpec((tn, K1), lambda j, i: (i, 0)),
            pl.BlockSpec((tn, K2), lambda j, i: (i, 0)),
            pl.BlockSpec((K1, tv), lambda j, i: (0, j)),
            pl.BlockSpec((K2, tv), lambda j, i: (0, j)),
            pl.BlockSpec((1, tv), lambda j, i: (0, j)),
        ],
        out_specs=pl.BlockSpec((tn, tv), lambda j, i: (i, j)),
        compiler_params=_mosaic_params(("parallel", "parallel"), ws_bytes),
    )(x1, x2, w1_t, w2_t, b)
    return out[:N, :V]


# -------------------------- LSTM recurrence kernel ---------------------------
def _make_recurrence_kernel(tb, hp, t_total, t_padded):
    masked = t_padded != t_total

    def kernel(gin_ref, h0_ref, c0_ref, whh_ref, y_ref, hn_ref, cn_ref):
        t_blk = pl.program_id(1)

        # hn/cn output blocks are resident across the (arbitrary) time grid and
        # serve directly as the h/c carry: no scratch, no per-step state copies.
        @pl.when(t_blk == 0)
        def _():
            hn_ref[...] = h0_ref[...]
            cn_ref[...] = c0_ref[...]

        whh = whh_ref[...]                                # (Hp, 4*Hp) bf16

        def step(i, carry):
            h, c = carry                                  # f32 carries
            # input projection was precomputed; only the recurrent matmul here.
            g = (gin_ref[i].astype(jnp.float32)
                 + jnp.dot(h.astype(jnp.bfloat16), whh,
                           preferred_element_type=jnp.float32))
            i_g = jax.nn.sigmoid(g[:, 0 * hp:1 * hp])
            f_g = jax.nn.sigmoid(g[:, 1 * hp:2 * hp])
            g_g = jnp.tanh(g[:, 2 * hp:3 * hp])
            o_g = jax.nn.sigmoid(g[:, 3 * hp:4 * hp])
            c_new = f_g * c + i_g * g_g
            h_new = o_g * jnp.tanh(c_new)
            y_ref[i] = h_new.astype(y_ref.dtype)
            if masked:                                    # padded tail timestep:
                valid = (t_blk * tb + i) < t_total        # freeze the carry
                h_new = jnp.where(valid, h_new, h)
                c_new = jnp.where(valid, c_new, c)
            return (h_new, c_new)

        h_fin, c_fin = jax.lax.fori_loop(
            0, tb, step, (hn_ref[...], cn_ref[...]), unroll=2)
        hn_ref[...] = h_fin
        cn_ref[...] = c_fin

    return kernel


def lstm_recurrence(gates_in, h0, c0, whh_t, hp, tb, t_total):
    """gates_in: (Tp,Bp,4*Hp) bf16; h0/c0: (Bp,Hp) f32; whh_t: (Hp,4*Hp) bf16."""
    Tp, Bp, G = gates_in.shape
    # v7x: split the batch over the two TensorCores when each half still holds
    # a full 8-sublane tile (rows are independent, no cross-core sync needed).
    n_bsplit = 2 if (Bp >= 16 and Bp % 16 == 0) else 1
    bb = Bp // n_bsplit
    # constant index_map -> double buffering only burns VMEM
    single = pl.Buffered(1)
    vmem_bytes = (2 * tb * bb * G * 2        # gin tile (bf16, double buffered)
                  + 2 * bb * hp * 4          # h0 + c0 (f32, single buffered)
                  + hp * G * 2               # whh (bf16, single buffered)
                  + 2 * tb * bb * hp * 2     # y tile (bf16, double buffered)
                  + 2 * 2 * bb * hp * 4)     # hn + cn (f32, resident outputs)
    return pl.pallas_call(
        _make_recurrence_kernel(tb, hp, t_total, Tp),
        out_shape=(jax.ShapeDtypeStruct((Tp, Bp, hp), jnp.bfloat16),
                   jax.ShapeDtypeStruct((Bp, hp), jnp.float32),
                   jax.ShapeDtypeStruct((Bp, hp), jnp.float32)),
        grid=(n_bsplit, Tp // tb),
        in_specs=[
            pl.BlockSpec((tb, bb, G), lambda b, t: (t, b, 0)),
            pl.BlockSpec((bb, hp), lambda b, t: (b, 0), pipeline_mode=single),
            pl.BlockSpec((bb, hp), lambda b, t: (b, 0), pipeline_mode=single),
            pl.BlockSpec((hp, G), lambda b, t: (0, 0), pipeline_mode=single),
        ],
        out_specs=(
            pl.BlockSpec((tb, bb, hp), lambda b, t: (t, b, 0)),
            pl.BlockSpec((bb, hp), lambda b, t: (b, 0)),   # resident h carry
            pl.BlockSpec((bb, hp), lambda b, t: (b, 0)),   # resident c carry
        ),
        compiler_params=_mosaic_params(("parallel", "arbitrary"), vmem_bytes),
    )(gates_in, h0, c0, whh_t)


# --------------------------- padding helpers ---------------------------------
def _pad_gate_cols(w_t, h, hp):
    """w_t: (in, 4*h) with gate layout [i|f|g|o] -> (in, 4*hp), per-gate zero pad."""
    if h == hp:
        return w_t
    inp = w_t.shape[0]
    return jnp.pad(w_t.reshape(inp, 4, h),
                   ((0, 0), (0, 0), (0, hp - h))).reshape(inp, 4 * hp)


def _pad_gate_vec(v, h, hp):
    if h == hp:
        return v
    return jnp.pad(v.reshape(4, h), ((0, 0), (0, hp - h))).reshape(4 * hp)


# ------------------------------- Full model ----------------------------------
class RNNModelPallas:
    """LSTM variant of the PyTorch RNNModel (eval-mode forward)."""

    def __init__(self, ntoken, ninp, nhid, nlayers, key, glove_dim=300):
        self.ntoken, self.ninp, self.nhid, self.nlayers = ntoken, ninp, nhid, nlayers
        self.glove_dim = glove_dim
        self.hpad = _round_up(nhid, 128)
        self.vpad = _round_up(ntoken, 128)
        H, Hp, Vp = nhid, self.hpad, self.vpad

        keys = jax.random.split(key, 2 + 4 * nlayers)
        initrange = 0.1
        # encoder (embedding) weight: uniform(-0.1, 0.1); gather stays f32.
        self.encoder_w = jax.random.uniform(
            keys[0], (ntoken, ninp), jnp.float32, -initrange, initrange)
        # decoder weight uniform(-0.1, 0.1), bias zeros; padded once, stored bf16.
        dec_w = jax.random.uniform(
            keys[1], (ntoken, nhid), jnp.float32, -initrange, initrange)
        self.decoder_w_t = (jnp.zeros((Hp, Vp), jnp.float32)
                            .at[:nhid, :ntoken].set(dec_w.T)).astype(jnp.bfloat16)
        self.decoder_b = jnp.zeros((1, Vp), jnp.float32)

        # LSTM weights: PyTorch default uniform(-1/sqrt(nhid), 1/sqrt(nhid)),
        # stored bf16 (f32 accumulation in the kernels).
        k = 1.0 / (nhid ** 0.5)
        in0 = ninp + glove_dim
        self.w_emb_t = None     # (ninp, 4*Hp)  bf16, layer-0 proj, embedding part
        self.w_glove_t = None   # (300,  4*Hp)  bf16, layer-0 proj, glove part
        self.wih_t = []         # layers >= 1: (Hp, 4*Hp) bf16
        self.whh_t = []         # (Hp, 4*Hp) bf16
        self.bias = []          # (1, 4*Hp)  f32 pre-summed (bih + bhh), gate-padded
        self.ref_params = []    # bf16-rounded weights (upcast) for the reference

        for l in range(nlayers):
            in_l = in0 if l == 0 else nhid
            kw = keys[2 + 4 * l:2 + 4 * (l + 1)]
            wih = jax.random.uniform(kw[0], (4 * H, in_l), jnp.float32, -k, k)
            whh = jax.random.uniform(kw[1], (4 * H, H), jnp.float32, -k, k)
            bih = jax.random.uniform(kw[2], (4 * H,), jnp.float32, -k, k)
            bhh = jax.random.uniform(kw[3], (4 * H,), jnp.float32, -k, k)
            # reference uses the same bf16-rounded weights (f32 activations).
            self.ref_params.append(
                (wih.astype(jnp.bfloat16).astype(jnp.float32).T,
                 whh.astype(jnp.bfloat16).astype(jnp.float32).T,
                 bih.reshape(1, -1), bhh.reshape(1, -1)))

            wih_t_p = _pad_gate_cols(wih.T, H, Hp)                   # (in_l, 4*Hp)
            whh_t_p = jnp.pad(_pad_gate_cols(whh.T, H, Hp),
                              ((0, Hp - H), (0, 0)))                 # (Hp,  4*Hp)
            b_p = _pad_gate_vec(bih + bhh, H, Hp).reshape(1, -1)

            if l == 0:
                # split layer-0 W_ih into emb/glove halves -> no HBM concat.
                self.w_emb_t = wih_t_p[:ninp].astype(jnp.bfloat16)
                self.w_glove_t = wih_t_p[ninp:].astype(jnp.bfloat16)
                self.wih_t.append(None)
            else:
                self.wih_t.append(jnp.pad(wih_t_p, ((0, Hp - H), (0, 0)))
                                  .astype(jnp.bfloat16))
            self.whh_t.append(whh_t_p.astype(jnp.bfloat16))
            self.bias.append(b_p)

    def __call__(self, tokens, glove_emb, hidden):
        h0, c0 = hidden                                 # (nlayers, B, nhid) f32
        T, B = tokens.shape
        H, Hp = self.nhid, self.hpad
        Bp = _round_up(B, 8)

        emb = self.encoder_w[tokens]                    # (T, B, ninp) gather (glue)
        glove = glove_emb
        # TODO(synk): training-mode dropout (input / inter-layer / output) not
        # implemented; eval-mode identity as in model.eval().
        if Bp != B:
            pad_b = ((0, 0), (0, Bp - B), (0, 0))
            emb = jnp.pad(emb, pad_b)
            glove = jnp.pad(glove, pad_b)
            h0 = jnp.pad(h0, pad_b)
            c0 = jnp.pad(c0, pad_b)
        if Hp != H:
            pad_h = ((0, 0), (0, 0), (0, Hp - H))
            h0 = jnp.pad(h0, pad_h)
            c0 = jnp.pad(c0, pad_h)

        N = T * Bp
        x_emb = emb.reshape(N, self.ninp).astype(jnp.bfloat16)
        x_glove = glove.reshape(N, self.glove_dim).astype(jnp.bfloat16)

        tb = min(8, T)
        Tp = _round_up(T, tb)

        # NOTE: throughput of the (inherently serial) recurrence scales almost
        # linearly with batch up to ~128-256 rows; batch more sequences per
        # call when the workload allows rather than shrinking the per-step cost.
        hs, cs = [], []
        cur = None
        for l in range(self.nlayers):
            # (1) input projection for all T timesteps at once (MXU-efficient),
            #     gate inputs written back in bf16.
            if l == 0:
                gin = matmul2_bias(x_emb, x_glove, self.w_emb_t,
                                   self.w_glove_t, self.bias[0],
                                   out_dtype=jnp.bfloat16)
            else:
                gin = matmul_bias(cur, self.wih_t[l], self.bias[l],
                                  out_dtype=jnp.bfloat16)
            gin = gin.reshape(T, Bp, 4 * Hp)
            if Tp != T:
                gin = jnp.pad(gin, ((0, Tp - T), (0, 0), (0, 0)))
            # (2) sequential recurrence: only h @ W_hh inside the time loop.
            y, hn_l, cn_l = lstm_recurrence(gin, h0[l], c0[l],
                                            self.whh_t[l], Hp, tb, T)
            hs.append(hn_l)
            cs.append(cn_l)
            cur = y[:T].reshape(N, Hp)                  # bf16

        # tiled decoder: (N, Hp) @ (Hp, Vpad) + b, f32 logits out.
        out = matmul_bias(cur, self.decoder_w_t, self.decoder_b,
                          out_dtype=jnp.float32)
        out = out.reshape(T, Bp, self.vpad)[:, :B, :self.ntoken]
        hn = jnp.stack(hs)[:, :B, :H]
        cn = jnp.stack(cs)[:, :B, :H]
        return out, (hn, cn)

    def init_hidden(self, bsz):
        z = jnp.zeros((self.nlayers, bsz, self.nhid), jnp.float32)
        return (z, z)


# ---------------------------- pure-JAX reference ------------------------------
def lstm_ref(x, h0, c0, params, nhid):
    def step(carry, xt):
        h, c = carry
        hs, cs = [], []
        inp = xt
        for l, (wih_t, whh_t, bih, bhh) in enumerate(params):
            gates = inp @ wih_t + h[l] @ whh_t + bih[0] + bhh[0]
            i = jax.nn.sigmoid(gates[:, :nhid])
            f = jax.nn.sigmoid(gates[:, nhid:2 * nhid])
            g = jnp.tanh(gates[:, 2 * nhid:3 * nhid])
            o = jax.nn.sigmoid(gates[:, 3 * nhid:])
            cn = f * c[l] + i * g
            hn = o * jnp.tanh(cn)
            hs.append(hn); cs.append(cn)
            inp = hn
        return (jnp.stack(hs), jnp.stack(cs)), inp

    (hT, cT), ys = jax.lax.scan(step, (h0, c0), x)
    return ys, hT, cT


if __name__ == "__main__":
    ntoken, ninp, nhid, nlayers = 64, 20, 32, 2
    T, B = 8, 4

    key = jax.random.PRNGKey(0)
    k_model, k_tok, k_glove = jax.random.split(key, 3)

    model = RNNModelPallas(ntoken, ninp, nhid, nlayers, k_model)
    tokens = jax.random.randint(k_tok, (T, B), 0, ntoken, dtype=jnp.int32)
    glove_emb = jax.random.normal(k_glove, (T, B, 300), jnp.float32)
    hidden = model.init_hidden(B)

    out_vocab, (hn, cn) = model(tokens, glove_emb, hidden)
    jax.block_until_ready((out_vocab, hn, cn))

    # numerical sanity check against a pure-JAX reference that uses the same
    # bf16-rounded weights (f32 activations); tolerance covers the kernel's
    # bf16 activation traffic (gin / y / h casts).
    emb = jnp.concatenate([model.encoder_w[tokens], glove_emb], axis=2)
    y_ref, h_ref, c_ref = lstm_ref(emb, hidden[0], hidden[1],
                                   model.ref_params, nhid)
    dec_w_t = model.decoder_w_t[:nhid, :ntoken].astype(jnp.float32)
    out_ref = (y_ref.reshape(T * B, nhid) @ dec_w_t
               + model.decoder_b[:, :ntoken]).reshape(T, B, ntoken)
    assert jnp.allclose(out_vocab, out_ref, atol=5e-2, rtol=5e-2)
    assert jnp.allclose(hn, h_ref, atol=5e-2, rtol=5e-2)
    assert jnp.allclose(cn, c_ref, atol=5e-2, rtol=5e-2)

    print("KERNEL_OK")
</pallas_src>

<mosaic_0001>
module attributes {stable_mosaic.version = 11 : i64} {
  func.func @_matmul2_bias_kernel(%arg0: i32, %arg1: i32, %arg2: memref<64x20xbf16, #tpu.memory_space<vmem>>, %arg3: memref<64x300xbf16, #tpu.memory_space<vmem>>, %arg4: memref<20x512xbf16, #tpu.memory_space<vmem>>, %arg5: memref<300x512xbf16, #tpu.memory_space<vmem>>, %arg6: memref<1x512xf32, #tpu.memory_space<vmem>>, %arg7: memref<64x512xbf16, #tpu.memory_space<vmem>>) attributes {dimension_semantics = [#tpu.dimension_semantics<parallel>, #tpu.dimension_semantics<parallel>], iteration_bounds = array<i64: 1, 1>, scalar_prefetch = 0 : i64, scratch_operands = 0 : i64, tpu.core_type = #tpu.core_type<tc>, window_params = [{transform_indices = @transform_0, window_bounds = array<i64: 64, 20>}, {transform_indices = @transform_1, window_bounds = array<i64: 64, 300>}, {transform_indices = @transform_2, window_bounds = array<i64: 20, 512>}, {transform_indices = @transform_3, window_bounds = array<i64: 300, 512>}, {transform_indices = @transform_4, window_bounds = array<i64: 1, 512>}, {transform_indices = @transform_5, window_bounds = array<i64: 64, 512>}]} {
    %c0 = arith.constant 0 : index
    %c0_0 = arith.constant 0 : index
    %0 = vector.load %arg2[%c0, %c0_0] : memref<64x20xbf16, #tpu.memory_space<vmem>>, vector<64x20xbf16>
    %c0_1 = arith.constant 0 : index
    %c0_2 = arith.constant 0 : index
    %1 = vector.load %arg4[%c0_1, %c0_2] : memref<20x512xbf16, #tpu.memory_space<vmem>>, vector<20x512xbf16>
    %cst = arith.constant dense<0.000000e+00> : vector<64x512xf32>
    %2 = tpu.matmul %0, %1, %cst {dimension_numbers = #tpu.dot_dimension_numbers<[1], [0], [0], [1], [0, 0, 1, 1], [], []>} : vector<64x20xbf16>, vector<20x512xbf16>, vector<64x512xf32> -> vector<64x512xf32>
    %c0_3 = arith.constant 0 : index
    %c0_4 = arith.constant 0 : index
    %3 = vector.load %arg3[%c0_3, %c0_4] : memref<64x300xbf16, #tpu.memory_space<vmem>>, vector<64x300xbf16>
    %c0_5 = arith.constant 0 : index
    %c0_6 = arith.constant 0 : index
    %4 = vector.load %arg5[%c0_5, %c0_6] : memref<300x512xbf16, #tpu.memory_space<vmem>>, vector<300x512xbf16>
    %cst_7 = arith.constant dense<0.000000e+00> : vector<64x512xf32>
    %5 = tpu.matmul %3, %4, %cst_7 {dimension_numbers = #tpu.dot_dimension_numbers<[1], [0], [0], [1], [0, 0, 1, 1], [], []>} : vector<64x300xbf16>, vector<300x512xbf16>, vector<64x512xf32> -> vector<64x512xf32>
    %6 = arith.addf %2, %5 : vector<64x512xf32>
    %c0_8 = arith.constant 0 : index
    %c0_9 = arith.constant 0 : index
    %7 = vector.load %arg6[%c0_8, %c0_9] : memref<1x512xf32, #tpu.memory_space<vmem>>, vector<1x512xf32>
    %8 = vector.broadcast %7 : vector<1x512xf32> to vector<64x512xf32>
    %9 = arith.addf %6, %8 : vector<64x512xf32>
    %10 = arith.truncf %9 : vector<64x512xf32> to vector<64x512xbf16>
    %c0_10 = arith.constant 0 : index
    %c0_11 = arith.constant 0 : index
    %11 = vector.load %arg7[%c0_10, %c0_11] : memref<64x512xbf16, #tpu.memory_space<vmem>>, vector<64x512xbf16>
    tpu.vector_store %arg7[%c0_10, %c0_11], %10 {strides = array<i32>} : memref<64x512xbf16, #tpu.memory_space<vmem>>, vector<64x512xbf16>,
    return
  }
  func.func @transform_0(%arg0: i32, %arg1: i32) -> (i32, i32) {
    %c0_i32 = arith.constant 0 : i32
    %c0_i32_0 = arith.constant 0 : i32
    return %arg1, %c0_i32 : i32, i32
  }
  func.func @transform_1(%arg0: i32, %arg1: i32) -> (i32, i32) {
    %c0_i32 = arith.constant 0 : i32
    %c0_i32_0 = arith.constant 0 : i32
    return %arg1, %c0_i32 : i32, i32
  }
  func.func @transform_2(%arg0: i32, %arg1: i32) -> (i32, i32) {
    %c0_i32 = arith.constant 0 : i32
    %c0_i32_0 = arith.constant 0 : i32
    return %c0_i32, %arg0 : i32, i32
  }
  func.func @transform_3(%arg0: i32, %arg1: i32) -> (i32, i32) {
    %c0_i32 = arith.constant 0 : i32
    %c0_i32_0 = arith.constant 0 : i32
    return %c0_i32, %arg0 : i32, i32
  }
  func.func @transform_4(%arg0: i32, %arg1: i32) -> (i32, i32) {
    %c0_i32 = arith.constant 0 : i32
    %c0_i32_0 = arith.constant 0 : i32
    return %c0_i32, %arg0 : i32, i32
  }
  func.func @transform_5(%arg0: i32, %arg1: i32) -> (i32, i32) {
    %c0_i32 = arith.constant 0 : i32
    return %arg1, %arg0 : i32, i32
  }
}

</mosaic_0001>

<bundles_post_ra>
// kernel: tpu_custom_call.1
= control target key start
LH: loop header
LB: loop body
LE: loop exit
PB: predicated region body
PF: predicated region fallthrough
CT: control target
= control target key end

     0   :  { %10 = vsyncpa [#allocation3], 0  ;;  %s2238_s0 = inlined_call_operand.vmem [shape: bf16[64,20], index: 0, kind: input, shape index: {}]   ;;  %s2239_s1 = inlined_call_operand.hbm [shape: bf16[64,300], index: 1, kind: input, shape index: {}]   ;;  %s2240_s2 = inlined_call_operand.hbm [shape: bf16[20,512], index: 2, kind: input, shape index: {}]   ;;  %s2241_s3 = inlined_call_operand.hbm [shape: bf16[300,512], index: 3, kind: input, shape index: {}]   ;;  %s2242_s4 = inlined_call_operand.vmem [shape: f32[1,512], index: 4, kind: input, shape index: {}]   ;;  %s2243_s5 = inlined_call_operand.hbm [shape: bf16[64,512], index: 5, kind: output, shape index: {}]  }
   0x1   :  { %11 = vsyncpa [#allocation6], 0  ;;  %s32_s20 = sshll.u32 %s2240_s2, 4  ;;  %s33_s20 = int_to_ptr.hbm [resolvable:$true] %s32_s20 }
   0x2   :  { %12 = vsyncpa [#allocation4], 0  ;;  %s1893_s21 = smov [#allocation5]   ;;  %s19_s25 = sshll.u32 %s2239_s1, 4  ;;  %s20_s25 = int_to_ptr.hbm [resolvable:$true] %s19_s25 }
   0x3   :  { %s34_s22 = sshll.u32 %s1893_s21, 4  ;;  %s1894_s26 = smov 256   ;;  %s35_s22 = int_to_ptr.vmem [resolvable:$true] %s34_s22 }
   0x4   :  { %s1895_s27 = smov 16   ;;  %s1896_s28 = smov [#allocation2]  }
   0x5   :  { %40 = dma.hbm_to_vmem [thread:$0]  %s33_s20, 768, %s35_s22, [#allocation6], %s1894_s26, %s1894_s26, %s1895_s27  }
   0x6   :  { %s21_s29 = sshll.u32 %s1896_s28, 4  ;;  %s1897_s2 = smov 192   ;;  %s22_s29 = int_to_ptr.vmem [resolvable:$true] %s21_s29 }
   0x7   :  { %s1898_s30 = smov 12   ;;  %s45_s8 = sshll.u32 %s2241_s3, 4  ;;  %s46_s8 = int_to_ptr.hbm [resolvable:$true] %s45_s8 }
   0x8   :  { %27 = dma.hbm_to_vmem [thread:$0]  %s20_s25, 1536, %s22_s29, [#allocation3], %s1897_s2, %s1897_s2, %s1898_s30  }
   0x9   :  { %s1899_s9 = smov [#allocation7]  }
   0xa   :  { %s47_s1 = sshll.u32 %s1899_s9, 4  ;;  %s48_s1 = int_to_ptr.vmem [resolvable:$true] %s47_s1 }
   0xb   :  { %53 = dma.hbm_to_vmem [thread:$0]  %s46_s8, 9728, %s48_s1, [#allocation6], %s1894_s26, %s1894_s26, %s1895_s27  }
   0xc   :  { %1887 = dma.done.wait [#allocation3], 1536  }
   0xd   :  { %1888 = vsyncadd [#allocation3], 4294965760 }
   0xe   :  { %1889 = dma.done.wait [#allocation6], 10496  }
   0xf   :  { %1890 = vsyncadd [#allocation6], 4294956800  ;;  %vm624_vm0 = vcmask 1045504   ;;  %v1433_v0 = vld [vmem:[#allocation7 + $0xe0] sm:$0xf]  ;;  %vm611_vm1 = vcmask 359424  }
  0x10   :  { %v1737_v1 = vld [vmem:[#allocation7 + $0xec] sm:$0xf0]  ;;  %v1561_v2 = vld [vmem:[#allocation7 + $0x1e0] sm:$0xf]  ;;  %v1735_v5 = vld [vmem:[#allocation7 + $0xe4] sm:$0xf] }
  0x11   :  { %v1434_v3 = vor.u32 %v1737_v1, %v1433_v0  ;;  %v1769_v4 = vld [vmem:[#allocation7 + $0x1ec] sm:$0xf0]  ;;  %v1435_v6 = vld [vmem:[#allocation7 + $0xf0] sm:$0xf0]  ;;  %v1609_v9 = vld [vmem:[#allocation7 + $0x240] sm:$0xf] }
  0x12   :  { %v1562_v7 = vor.u32 %v1769_v4, %v1561_v2  ;;  %v1438_v8 = vor.u32 %v1735_v5, %v1435_v6  ;;  %v1781_v10 = vld [vmem:[#allocation7 + $0x24c] sm:$0x30]  ;;  %v1417_v11 = vld [vmem:[#allocation7 + $0xc0] sm:$0xf]  ;;  %v1731_v18 = vld [vmem:[#allocation7 + $0xc4] sm:$0xf] }
  0x13   :  { %637 = vmatpush.bf16.msra.mxu0 %v1434_v3  ;;  %v1610_v12 = vor.u32 %v1781_v10, %v1609_v9  ;;  %v1733_v13 = vld [vmem:[#allocation7 + $0xcc] sm:$0xf0]  ;;  %v1545_v14 = vld [vmem:[#allocation7 + $0x1c0] sm:$0xf]  ;;  %v1419_v19 = vld [vmem:[#allocation7 + $0xd0] sm:$0xf0] }
  0x14   :  { %v1765_v15 = vld [vmem:[#allocation7 + $0x1cc] sm:$0xf0]  ;;  %666 = vmatpush.bf16.msra.mxu1 %v1562_v7  ;;  %724 = vmatpush.bf16.msra.mxu3 %v1438_v8  ;;  %v1418_v16 = vor.u32 %v1733_v13, %v1417_v11  ;;  %v1593_v20 = vld [vmem:[#allocation7 + $0x220] sm:$0xf]  ;;  %v1422_v22 = vor.u32 %v1731_v18, %v1419_v19  ;;  %v1727_v30 = vld [vmem:[#allocation7 + $0xa4] sm:$0xf] }
  0x15   :  { %v1546_v17 = vor.u32 %v1765_v15, %v1545_v14  ;;  %v626_v21 = vsel %vm624_vm0, %v1610_v12, 0  ;;  %v1777_v23 = vld [vmem:[#allocation7 + $0x22c] sm:$0xf0]  ;;  %v1401_v24 = vld [vmem:[#allocation7 + $0xa0] sm:$0xf]  ;;  %vm1048_vm2 = vcmask 1041408  }
  0x16   :  { %700 = vmatpush.bf16.msra.mxu2 %v626_v21  ;;  %v1594_v25 = vor.u32 %v1777_v23, %v1593_v20  ;;  %v1729_v26 = vld [vmem:[#allocation7 + $0xac] sm:$0xf0]  ;;  %v1529_v27 = vld [vmem:[#allocation7 + $0x1a0] sm:$0xf]  ;;  %v1403_v31 = vld [vmem:[#allocation7 + $0xb0] sm:$0xf0] }
  0x17   :  { %v1761_v28 = vld [vmem:[#allocation7 + $0x1ac] sm:$0xf0]  ;;  %638 = vmatpush.bf16.msra.mxu0 %v1418_v16  ;;  %v1402_v29 = vor.u32 %v1729_v26, %v1401_v24  ;;  %v1577_v32 = vld [vmem:[#allocation7 + $0x200] sm:$0xf]  ;;  %v1406_v34 = vor.u32 %v1727_v30, %v1403_v31  ;;  %v1281_v40 = vld [vmem:[#allocation2 + $0x8] sm:$0xf] }
  0x18   :  { %667 = vmatpush.bf16.msra.mxu1 %v1546_v17  ;;  %725 = vmatpush.bf16.msra.mxu3 %v1422_v22  ;;  %v1530_v33 = vor.u32 %v1761_v28, %v1529_v27  ;;  %v1773_v35 = vld [vmem:[#allocation7 + $0x20c] sm:$0xf0]  ;;  %v1385_v36 = vld [vmem:[#allocation7 + $0x80] sm:$0xf]  ;;  %v1697_v42 = vld [vmem:[#allocation2 + $0x10] sm:$0xf0] }
  0x19   :  { %v1725_v37 = vld [vmem:[#allocation7 + $0x8c] sm:$0xf0]  ;;  %v1513_v38 = vld [vmem:[#allocation7 + $0x180] sm:$0xf]  ;;  %v1578_v41 = vor.u32 %v1773_v35, %v1577_v32  ;;  %v1723_v43 = vld [vmem:[#allocation7 + $0x84] sm:$0xf]  ;;  %v1947_v51 = vor.u32 %v1697_v42, %v1281_v40 }
  0x1a   :  { %v1757_v39 = vld [vmem:[#allocation7 + $0x18c] sm:$0xf0]  ;;  %701 = vmatpush.bf16.msra.mxu2 %v1594_v25  ;;  %v1387_v44 = vld [vmem:[#allocation7 + $0x90] sm:$0xf0]  ;;  %v1386_v45 = vor.u32 %v1725_v37, %v1385_v36  ;;  %v1369_v48 = vld [vmem:[#allocation7 + $0x60] sm:$0xf] }
  0x1b   :  { %639 = vmatpush.bf16.msra.mxu0 %v1402_v29  ;;  %v1514_v46 = vor.u32 %v1757_v39, %v1513_v38  ;;  %v1390_v47 = vor.u32 %v1723_v43, %v1387_v44  ;;  %v1721_v49 = vld [vmem:[#allocation7 + $0x6c] sm:$0xf0]  ;;  %v1497_v50 = vld [vmem:[#allocation7 + $0x160] sm:$0xf]  ;;  %v1719_v53 = vld [vmem:[#allocation7 + $0x64] sm:$0xf] }
  0x1c   :  { %668 = vmatpush.bf16.msra.mxu1 %v1530_v33  ;;  %726 = vmatpush.bf16.msra.mxu3 %v1406_v34  ;;  %v1753_v52 = vld [vmem:[#allocation7 + $0x16c] sm:$0xf0]  ;;  %v1371_v54 = vld [vmem:[#allocation7 + $0x70] sm:$0xf0]  ;;  %v1370_v55 = vor.u32 %v1721_v49, %v1369_v48  ;;  %v1353_v58 = vld [vmem:[#allocation7 + $0x40] sm:$0xf] }
  0x1d   :  { %v1498_v56 = vor.u32 %v1753_v52, %v1497_v50  ;;  %v1374_v57 = vor.u32 %v1719_v53, %v1371_v54  ;;  %v1717_v59 = vld [vmem:[#allocation7 + $0x4c] sm:$0xf0]  ;;  %v1481_v60 = vld [vmem:[#allocation7 + $0x140] sm:$0xf]  ;;  %v1715_v62 = vld [vmem:[#allocation7 + $0x44] sm:$0xf] }
  0x1e   :  { %702 = vmatpush.bf16.msra.mxu2 %v1578_v41  ;;  %v1749_v61 = vld [vmem:[#allocation7 + $0x14c] sm:$0xf0]  ;;  %v1355_v63 = vld [vmem:[#allocation7 + $0x50] sm:$0xf0]  ;;  %v1354_v0 = vor.u32 %v1717_v59, %v1353_v58  ;;  %v1337_v1 = vld [vmem:[#allocation7 + $0x20] sm:$0xf] }
  0x1f   :  { %640 = vmatpush.bf16.msra.mxu0 %v1386_v45  ;;  %v1713_v2 = vld [vmem:[#allocation7 + $0x2c] sm:$0xf0]  ;;  %v1482_v3 = vor.u32 %v1749_v61, %v1481_v60  ;;  %v1358_v4 = vor.u32 %v1715_v62, %v1355_v63  ;;  %v1465_v5 = vld [vmem:[#allocation7 + $0x120] sm:$0xf]  ;;  %v1711_v7 = vld [vmem:[#allocation7 + $0x24] sm:$0xf] }
  0x20   :  { %669 = vmatpush.bf16.msra.mxu1 %v1514_v46  ;;  %727 = vmatpush.bf16.msra.mxu3 %v1390_v47  ;;  %v1745_v6 = vld [vmem:[#allocation7 + $0x12c] sm:$0xf0]  ;;  %v1339_v8 = vld [vmem:[#allocation7 + $0x30] sm:$0xf0]  ;;  %v1767_v9 = vld [vmem:[#allocation7 + $0x1e4] sm:$0xf]  ;;  %v1338_v14 = vor.u32 %v1713_v2, %v1337_v1 }
  0x21   :  { %1623 = vmatmul.msk.bf16.vlgmr.msra.gmra.mxu2 %vm611_vm1, %v1947_v51  ;;  %v1563_v10 = vld [vmem:[#allocation7 + $0x1f0] sm:$0xf0]  ;;  %v1321_v11 = vld [vmem:[#allocation7] sm:$0xf]  ;;  %v1709_v12 = vld [vmem:[#allocation7 + $0xc] sm:$0xf0]  ;;  %v1466_v18 = vor.u32 %v1745_v6, %v1465_v5  ;;  %v1342_v19 = vor.u32 %v1711_v7, %v1339_v8 }
  0x22   :  { %v1566_v13 = vor.u32 %v1767_v9, %v1563_v10  ;;  %v1449_v15 = vld [vmem:[#allocation7 + $0x100] sm:$0xf]  ;;  %v1741_v16 = vld [vmem:[#allocation7 + $0x10c] sm:$0xf0]  ;;  %v1763_v17 = vld [vmem:[#allocation7 + $0x1c4] sm:$0xf]  ;;  %v1322_v31 = vor.u32 %v1709_v12, %v1321_v11 }
  0x23   :  { %641 = vmatpush.bf16.msra.mxu0 %v1370_v55  ;;  %v1293_v20 = vld [vmem:[#allocation2 + $0x20] sm:$0xf]  ;;  %v1700_v21 = vld [vmem:[#allocation2 + $0x28] sm:$0xf0]  ;;  %v1707_v22 = vld [vmem:[#allocation7 + $0x4] sm:$0xf]  ;;  %v1450_v35 = vor.u32 %v1741_v16, %v1449_v15 }
  0x24   :  { %670 = vmatpush.bf16.msra.mxu1 %v1498_v56  ;;  %728 = vmatpush.bf16.msra.mxu3 %v1374_v57  ;;  %v1547_v23 = vld [vmem:[#allocation7 + $0x1d0] sm:$0xf0]  ;;  %v1779_v25 = vld [vmem:[#allocation7 + $0x244] sm:$0xf]  ;;  %v1273_v28 = vld [vmem:[#allocation2] sm:$0xf]  ;;  %v1951_v40 = vor.u32 %v1700_v21, %v1293_v20 }
  0x25   :  { %v1323_v24 = vld [vmem:[#allocation7 + $0x10] sm:$0xf0]  ;;  %753 = vmatpush.bf16.msrb.mxu2 %v1566_v13  ;;  %v1550_v27 = vor.u32 %v1763_v17, %v1547_v23  ;;  %v1569_v29 = vld [vmem:[#allocation7 + $0x1e8] sm:$0xf]  ;;  %v1770_v30 = vld [vmem:[#allocation7 + $0x1f4] sm:$0xf0] }
  0x26   :  { %v1611_v26 = vld [vmem:[#allocation7 + $0x250] sm:$0x30]  ;;  %v1696_v32 = vld [vmem:[#allocation2 + $0x8] sm:$0xf0]  ;;  %v1441_v33 = vld [vmem:[#allocation7 + $0xe8] sm:$0xf]  ;;  %v1326_v36 = vor.u32 %v1707_v22, %v1323_v24  ;;  %v1570_v41 = vor.u32 %v1770_v30, %v1569_v29 }
  0x27   :  { %642 = vmatpush.bf16.msra.mxu0 %v1354_v0  ;;  %v1738_v34 = vld [vmem:[#allocation7 + $0xf4] sm:$0xf0]  ;;  %v1695_v37 = vld [vmem:[#allocation2 + $0x4] sm:$0xf]  ;;  %v1275_v38 = vld [vmem:[#allocation2 + $0xc] sm:$0xf0]  ;;  %v1614_v39 = vor.u32 %v1779_v25, %v1611_v26  ;;  %v1953_v44 = vor.u32 %v1696_v32, %v1273_v28 }
  0x28   :  { %671 = vmatpush.bf16.msra.mxu1 %v1482_v3  ;;  %729 = vmatpush.bf16.msra.mxu3 %v1358_v4  ;;  %v1759_v42 = vld [vmem:[#allocation7 + $0x1a4] sm:$0xf]  ;;  %v1531_v43 = vld [vmem:[#allocation7 + $0x1b0] sm:$0xf0]  ;;  %v1442_v45 = vor.u32 %v1738_v34, %v1441_v33  ;;  %v1553_v46 = vld [vmem:[#allocation7 + $0x1c8] sm:$0xf]  ;;  %v1955_v48 = vor.u32 %v1695_v37, %v1275_v38 }
  0x29   :  { %754 = vmatpush.bf16.msrb.mxu2 %v1550_v27  ;;  %v1766_v47 = vld [vmem:[#allocation7 + $0x1d4] sm:$0xf0]  ;;  %v1425_v49 = vld [vmem:[#allocation7 + $0xc8] sm:$0xf]  ;;  %v629_v52 = vsel %vm624_vm0, %v1614_v39, 0  ;;  %v1534_v53 = vor.u32 %v1759_v42, %v1531_v43  ;;  %vm1035_vm3 = vcmask 162816  }
  0x2a   :  { %v1734_v50 = vld [vmem:[#allocation7 + $0xd4] sm:$0xf0]  ;;  %v1755_v54 = vld [vmem:[#allocation7 + $0x184] sm:$0xf]  ;;  %v1554_v55 = vor.u32 %v1766_v47, %v1553_v46  ;;  %v1515_v56 = vld [vmem:[#allocation7 + $0x190] sm:$0xf0] }
  0x2b   :  { %643 = vmatpush.bf16.msra.mxu0 %v1338_v14  ;;  %v1775_v57 = vld [vmem:[#allocation7 + $0x224] sm:$0xf]  ;;  %v1595_v58 = vld [vmem:[#allocation7 + $0x230] sm:$0xf0]  ;;  %v1426_v59 = vor.u32 %v1734_v50, %v1425_v49  ;;  %v1537_v60 = vld [vmem:[#allocation7 + $0x1a8] sm:$0xf]  ;;  %v1518_v0 = vor.u32 %v1755_v54, %v1515_v56 }
  0x2c   :  { %672 = vmatpush.bf16.msra.mxu1 %v1466_v18  ;;  %730 = vmatpush.bf16.msra.mxu3 %v1342_v19  ;;  %v1762_v61 = vld [vmem:[#allocation7 + $0x1b4] sm:$0xf0]  ;;  %v1409_v62 = vld [vmem:[#allocation7 + $0xa8] sm:$0xf]  ;;  %v1598_v1 = vor.u32 %v1775_v57, %v1595_v58  ;;  %v1751_v3 = vld [vmem:[#allocation7 + $0x164] sm:$0xf] }
  0x2d   :  { %v1730_v63 = vld [vmem:[#allocation7 + $0xb4] sm:$0xf0]  ;;  %755 = vmatpush.bf16.msrb.mxu2 %v1534_v53  ;;  %v1538_v2 = vor.u32 %v1762_v61, %v1537_v60  ;;  %v1499_v4 = vld [vmem:[#allocation7 + $0x170] sm:$0xf0]  ;;  %v1521_v6 = vld [vmem:[#allocation7 + $0x188] sm:$0xf] }
  0x2e   :  { %v1410_v5 = vor.u32 %v1730_v63, %v1409_v62  ;;  %v1758_v7 = vld [vmem:[#allocation7 + $0x194] sm:$0xf0]  ;;  %v1393_v8 = vld [vmem:[#allocation7 + $0x88] sm:$0xf]  ;;  %v1502_v11 = vor.u32 %v1751_v3, %v1499_v4  ;;  %v1703_v12 = vld [vmem:[#allocation2 + $0x40] sm:$0xf0] }
  0x2f   :  { %644 = vmatpush.bf16.msra.mxu0 %v1322_v31  ;;  %v1726_v9 = vld [vmem:[#allocation7 + $0x94] sm:$0xf0]  ;;  %v1305_v10 = vld [vmem:[#allocation2 + $0x38] sm:$0xf]  ;;  %v1522_v13 = vor.u32 %v1758_v7, %v1521_v6  ;;  %v1747_v14 = vld [vmem:[#allocation7 + $0x144] sm:$0xf] }
  0x30   :  { %673 = vmatpush.bf16.msra.mxu1 %v1450_v35  ;;  %731 = vmatpush.bf16.msra.mxu3 %v1326_v36  ;;  %v1483_v15 = vld [vmem:[#allocation7 + $0x150] sm:$0xf0]  ;;  %v1285_v16 = vld [vmem:[#allocation2 + $0x18] sm:$0xf]  ;;  %v1394_v17 = vor.u32 %v1726_v9, %v1393_v8  ;;  %v1754_v19 = vld [vmem:[#allocation7 + $0x174] sm:$0xf0]  ;;  %v1963_v26 = vor.u32 %v1703_v12, %v1305_v10 }
  0x31   :  { %1624 = vmatmul.msk.bf16.gmra.mxu2 %vm611_vm1, %v1951_v40  ;;  %v1505_v18 = vld [vmem:[#allocation7 + $0x168] sm:$0xf]  ;;  %v1699_v20 = vld [vmem:[#allocation2 + $0x20] sm:$0xf0]  ;;  %v1722_v22 = vld [vmem:[#allocation7 + $0x74] sm:$0xf0]  ;;  %v1486_v25 = vor.u32 %v1747_v14, %v1483_v15 }
  0x32   :  { %645 = vmatmul.bf16.vlgmr.msra.gmra.mxu0 %v1953_v44  ;;  %756 = vmatpush.bf16.msrb.mxu2 %v1518_v0  ;;  %v1377_v21 = vld [vmem:[#allocation7 + $0x68] sm:$0xf]  ;;  %v1698_v23 = vld [vmem:[#allocation2 + $0x1c] sm:$0xf]  ;;  %v1287_v24 = vld [vmem:[#allocation2 + $0x24] sm:$0xf0]  ;;  %v1506_v27 = vor.u32 %v1754_v19, %v1505_v18  ;;  %v1965_v30 = vor.u32 %v1699_v20, %v1285_v16 }
  0x33   :  { %674 = vmatmul.bf16.vlgmr.msra.gmra.mxu1 %v1955_v48  ;;  %732 = vmatmul.bf16.vlgmr.msra.gmra.mxu3 %v1953_v44  ;;  %v1743_v28 = vld [vmem:[#allocation7 + $0x124] sm:$0xf]  ;;  %v1467_v29 = vld [vmem:[#allocation7 + $0x130] sm:$0xf0]  ;;  %v1378_v31 = vor.u32 %v1722_v22, %v1377_v21  ;;  %v1489_v32 = vld [vmem:[#allocation7 + $0x148] sm:$0xf]  ;;  %v1967_v34 = vor.u32 %v1698_v23, %v1287_v24 }
  0x34   :  { %840 = vmatpush.bf16.msrb.mxu3 %v1570_v41  ;;  %811 = vmatpush.bf16.msrb.mxu1 %v1442_v45  ;;  %v1750_v33 = vld [vmem:[#allocation7 + $0x154] sm:$0xf0]  ;;  %v1470_v35 = vor.u32 %v1743_v28, %v1467_v29  ;;  %v1739_v36 = vld [vmem:[#allocation7 + $0x104] sm:$0xf]  ;;  %v1451_v38 = vld [vmem:[#allocation7 + $0x110] sm:$0xf0] }
  0x35   :  { %787 = vmatpush.bf16.msrb.mxu0 %v629_v52  ;;  %v1490_v37 = vor.u32 %v1750_v33, %v1489_v32  ;;  %v1361_v39 = vld [vmem:[#allocation7 + $0x48] sm:$0xf]  ;;  %v1718_v41 = vld [vmem:[#allocation7 + $0x54] sm:$0xf0]  ;;  %v1771_v46 = vld [vmem:[#allocation7 + $0x204] sm:$0xf]  ;;  %v1454_v47 = vor.u32 %v1739_v36, %v1451_v38 }
  0x36   :  { %757 = vmatpush.bf16.msrb.mxu2 %v1502_v11  ;;  %v1362_v42 = vor.u32 %v1718_v41, %v1361_v39  ;;  %v1473_v43 = vld [vmem:[#allocation7 + $0x128] sm:$0xf]  ;;  %v1746_v45 = vld [vmem:[#allocation7 + $0x134] sm:$0xf0]  ;;  %v1579_v49 = vld [vmem:[#allocation7 + $0x210] sm:$0xf0] }
  0x37   :  { %v1345_v50 = vld [vmem:[#allocation7 + $0x28] sm:$0xf]  ;;  %v1714_v52 = vld [vmem:[#allocation7 + $0x34] sm:$0xf0]  ;;  %v1474_v53 = vor.u32 %v1746_v45, %v1473_v43  ;;  %v1582_v54 = vor.u32 %v1771_v46, %v1579_v49  ;;  %v1706_v60 = vld [vmem:[#allocation2 + $0x58] sm:$0xf0] }
  0x38   :  { %841 = vmatpush.bf16.msrb.mxu3 %v1554_v55  ;;  %812 = vmatpush.bf16.msrb.mxu1 %v1426_v59  ;;  %v1346_v55 = vor.u32 %v1714_v52, %v1345_v50  ;;  %v1457_v56 = vld [vmem:[#allocation7 + $0x108] sm:$0xf]  ;;  %v1742_v57 = vld [vmem:[#allocation7 + $0x114] sm:$0xf0]  ;;  %v1317_v59 = vld [vmem:[#allocation2 + $0x50] sm:$0xf] }
  0x39   :  { %788 = vmatpush.bf16.msrb.mxu0 %v1598_v1  ;;  %v1458_v58 = vor.u32 %v1742_v57, %v1457_v56  ;;  %v1297_v61 = vld [vmem:[#allocation2 + $0x30] sm:$0xf]  ;;  %v1702_v62 = vld [vmem:[#allocation2 + $0x38] sm:$0xf0]  ;;  %v1701_v63 = vld [vmem:[#allocation2 + $0x34] sm:$0xf]  ;;  %v1974_v1 = vor.u32 %v1706_v60, %v1317_v59 }
  0x3a   :  { %758 = vmatpush.bf16.msrb.mxu2 %v1486_v25  ;;  %v1299_v0 = vld [vmem:[#allocation2 + $0x3c] sm:$0xf0]  ;;  %v1329_v3 = vld [vmem:[#allocation7 + $0x8] sm:$0xf]  ;;  %v1710_v4 = vld [vmem:[#allocation7 + $0x14] sm:$0xf0] }
  0x3b   :  { %v1330_v6 = vor.u32 %v1710_v4, %v1329_v3  ;;  %v1617_v7 = vld [vmem:[#allocation7 + $0x248] sm:$0xf]  ;;  %v1782_v8 = vld [vmem:[#allocation7 + $0x254] sm:$0x30]  ;;  %v1780_v9 = vld [vmem:[#allocation7 + $0x24c] sm:$0xf] }
  0x3c   :  { %842 = vmatpush.bf16.msrb.mxu3 %v1538_v2  ;;  %813 = vmatpush.bf16.msrb.mxu1 %v1410_v5  ;;  %v1976_v2 = vor.u32 %v1702_v62, %v1297_v61  ;;  %v1978_v5 = vor.u32 %v1701_v63, %v1299_v0  ;;  %v1618_v10 = vor.u32 %v1782_v8, %v1617_v7  ;;  %v1619_v11 = vld [vmem:[#allocation7 + $0x258] sm:$0x30]  ;;  %v1736_v12 = vld [vmem:[#allocation7 + $0xec] sm:$0xf]  ;;  %v1309_v21 = vld [vmem:[#allocation2 + $0x48] sm:$0xf] }
  0x3d   :  { %789 = vmatpush.bf16.msrb.mxu0 %v1582_v54  ;;  %v1622_v14 = vor.u32 %v1780_v9, %v1619_v11  ;;  %v1768_v16 = vld [vmem:[#allocation7 + $0x1ec] sm:$0xf]  ;;  %v1705_v22 = vld [vmem:[#allocation2 + $0x50] sm:$0xf0]  ;;  %v1704_v23 = vld [vmem:[#allocation2 + $0x4c] sm:$0xf] }
  0x3e   :  { %759 = vmatpush.bf16.msrb.mxu2 %v1470_v35  ;;  %v632_v18 = vsel %vm624_vm0, %v1618_v10, 0  ;;  %v1311_v24 = vld [vmem:[#allocation2 + $0x54] sm:$0xf0]  ;;  %v1987_v25 = vor.u32 %v1705_v22, %v1309_v21  ;;  %v1732_v28 = vld [vmem:[#allocation7 + $0xcc] sm:$0xf]  ;;  %s1257_s21 = sshll.u32 %s2243_s5, 4  ;;  %s1258_s21 = int_to_ptr.hbm [resolvable:$true] %s1257_s21 }
  0x3f   :  { %v635_v20 = vsel %vm624_vm0, %v1622_v14, 0  ;;  %v1427_v29 = vld [vmem:[#allocation7 + $0xd8] sm:$0xf0]  ;;  %v1601_v36 = vld [vmem:[#allocation7 + $0x228] sm:$0xf] }
  0x40   :  { %843 = vmatpush.bf16.msrb.mxu3 %v1522_v13  ;;  %814 = vmatpush.bf16.msrb.mxu1 %v1394_v17  ;;  %v1443_v13 = vld [vmem:[#allocation7 + $0xf8] sm:$0xf0]  ;;  %v1430_v32 = vor.u32 %v1732_v28, %v1427_v29  ;;  %v1728_v38 = vld [vmem:[#allocation7 + $0xac] sm:$0xf]  ;;  %v1585_v63 = vld [vmem:[#allocation7 + $0x208] sm:$0xf] }
  0x41   :  { %1625 = vmatmul.msk.bf16.gmra.mxu2 %vm611_vm1, %v1963_v26  ;;  %v1446_v15 = vor.u32 %v1736_v12, %v1443_v13  ;;  %v1571_v17 = vld [vmem:[#allocation7 + $0x1f8] sm:$0xf0]  ;;  %v1724_v52 = vld [vmem:[#allocation7 + $0x8c] sm:$0xf]  ;;  %v1774_v0 = vld [vmem:[#allocation7 + $0x214] sm:$0xf0] }
  0x42   :  { %650 = vmatmul.bf16.gmra.mxu0 %v1965_v30  ;;  %760 = vmatpush.bf16.msrb.mxu2 %v1454_v47  ;;  %v1574_v19 = vor.u32 %v1768_v16, %v1571_v17  ;;  %v1555_v33 = vld [vmem:[#allocation7 + $0x1d8] sm:$0xf0]  ;;  %v1776_v47 = vld [vmem:[#allocation7 + $0x22c] sm:$0xf]  ;;  %v1586_v4 = vor.u32 %v1774_v0, %v1585_v63 }
  0x43   :  { %679 = vmatmul.bf16.gmra.mxu1 %v1967_v34  ;;  %737 = vmatmul.bf16.gmra.mxu3 %v1965_v30  ;;  %v1411_v41 = vld [vmem:[#allocation7 + $0xb8] sm:$0xf0]  ;;  %v1756_v54 = vld [vmem:[#allocation7 + $0x18c] sm:$0xf] }
  0x44   :  { %844 = vmatpush.bf16.msrb.mxu3 %v1506_v27  ;;  %815 = vmatpush.bf16.msrb.mxu1 %v1378_v31  ;;  %v1989_v27 = vor.u32 %v1704_v23, %v1311_v24  ;;  %v1764_v31 = vld [vmem:[#allocation7 + $0x1cc] sm:$0xf]  ;;  %v1539_v43 = vld [vmem:[#allocation7 + $0x1b8] sm:$0xf0]  ;;  %v1414_v45 = vor.u32 %v1728_v38, %v1411_v41 }
  0x45   :  { %898 = vmatpush.bf16.msra.mxu0 %v1446_v15  ;;  %v1558_v35 = vor.u32 %v1764_v31, %v1555_v33  ;;  %v1603_v49 = vld [vmem:[#allocation7 + $0x238] sm:$0xf0]  ;;  %v1752_v60 = vld [vmem:[#allocation7 + $0x16c] sm:$0xf]  ;;  %v81_v31 = vld [vmem:[#allocation5 + $0x20] sm:$0x33] }
  0x46   :  { %874 = vmatpush.bf16.msra.mxu2 %v632_v18  ;;  %v1606_v50 = vor.u32 %v1776_v47, %v1603_v49  ;;  %v1523_v56 = vld [vmem:[#allocation7 + $0x198] sm:$0xf0]  ;;  %v1716_v9 = vld [vmem:[#allocation7 + $0x4c] sm:$0xf]  ;;  %v1019_v33 = vunpack.c.l.b16 %v81_v31  ;;  %v1020_v41 = vunpack.c.h.b16 %v81_v31 }
  0x47   :  { %v1526_v57 = vor.u32 %v1756_v54, %v1523_v56  ;;  %v1379_v59 = vld [vmem:[#allocation7 + $0x78] sm:$0xf0]  ;;  %v1748_v11 = vld [vmem:[#allocation7 + $0x14c] sm:$0xf] }
  0x48   :  { %845 = vmatpush.bf16.msrb.mxu3 %v1490_v37  ;;  %816 = vmatpush.bf16.msrb.mxu1 %v1362_v42  ;;  %v1778_v37 = vld [vmem:[#allocation7 + $0x234] sm:$0xf0]  ;;  %v1760_v42 = vld [vmem:[#allocation7 + $0x1ac] sm:$0xf]  ;;  %v1507_v62 = vld [vmem:[#allocation7 + $0x178] sm:$0xf0] }
  0x49   :  { %899 = vmatpush.bf16.msra.mxu0 %v1430_v32  ;;  %v1602_v39 = vor.u32 %v1778_v37, %v1601_v36  ;;  %v1542_v46 = vor.u32 %v1760_v42, %v1539_v43  ;;  %v1510_v3 = vor.u32 %v1752_v60, %v1507_v62  ;;  %v1587_v7 = vld [vmem:[#allocation7 + $0x218] sm:$0xf0]  ;;  %v1712_v15 = vld [vmem:[#allocation7 + $0x2c] sm:$0xf]  ;;  %v1027_v36 = vpack.c.b16 %v1019_v33, %v1019_v33 }
  0x4a   :  { %v1363_v10 = vld [vmem:[#allocation7 + $0x58] sm:$0xf0]  ;;  %v1744_v17 = vld [vmem:[#allocation7 + $0x12c] sm:$0xf]  ;;  %v1028_v43 = vpack.c.b16 %v1020_v41, %v1020_v41 }
  0x4b   :  { %875 = vmatpush.bf16.msra.mxu2 %v1602_v39  ;;  %v1366_v12 = vor.u32 %v1716_v9, %v1363_v10  ;;  %v1491_v13 = vld [vmem:[#allocation7 + $0x158] sm:$0xf0]  ;;  %v1708_v21 = vld [vmem:[#allocation7 + $0xc] sm:$0xf]  ;;  %v1050_v38 = vsel %vm1048_vm2, %v1027_v36, 0 }
  0x4c   :  { %846 = vmatpush.bf16.msrb.mxu3 %v1474_v53  ;;  %817 = vmatpush.bf16.msrb.mxu1 %v1346_v55  ;;  %v1395_v53 = vld [vmem:[#allocation7 + $0x98] sm:$0xf0]  ;;  %v1494_v14 = vor.u32 %v1748_v11, %v1491_v13  ;;  %v1740_v23 = vld [vmem:[#allocation7 + $0x10c] sm:$0xf] }
  0x4d   :  { %900 = vmatpush.bf16.msra.mxu0 %v1414_v45  ;;  %v1398_v55 = vor.u32 %v1724_v52, %v1395_v53  ;;  %v1347_v16 = vld [vmem:[#allocation7 + $0x38] sm:$0xf0] }
  0x4e   :  { %v1350_v18 = vor.u32 %v1712_v15, %v1347_v16  ;;  %v1331_v22 = vld [vmem:[#allocation7 + $0x18] sm:$0xf0] }
  0x4f   :  { %876 = vmatpush.bf16.msra.mxu2 %v1586_v4  ;;  %v1334_v24 = vor.u32 %v1708_v21, %v1331_v22  ;;  %v1459_v28 = vld [vmem:[#allocation7 + $0x118] sm:$0xf0]  ;;  %v1691_v4 = vld [vmem:[#allocation5 + $0x4] sm:$0xf] }
  0x50   :  { %847 = vmatpush.bf16.msrb.mxu3 %v1458_v58  ;;  %818 = vmatpush.bf16.msrb.mxu1 %v1330_v6  ;;  %v1720_v58 = vld [vmem:[#allocation7 + $0x6c] sm:$0xf]  ;;  %v1462_v29 = vor.u32 %v1740_v23, %v1459_v28  ;;  %v82_v32 = vld [vmem:[#allocation5 + $0x28] sm:$0x33] }
  0x51   :  { %1626 = vmatmul.msk.bf16.gmra.mxu2 %vm611_vm1, %v1974_v1  ;;  %901 = vmatpush.bf16.msra.mxu0 %v1398_v55  ;;  %v1382_v61 = vor.u32 %v1720_v58, %v1379_v59  ;;  %v1772_v6 = vld [vmem:[#allocation7 + $0x20c] sm:$0xf]  ;;  %v1021_v42 = vunpack.c.l.b16 %v82_v32  ;;  %v1693_v58 = vld [vmem:[#allocation5 + $0xc] sm:$0xf0]  ;;  %v1692_v59 = vld [vmem:[#allocation5 + $0xc] sm:$0xf] }
  0x52   :  { %655 = vmatmul.bf16.gmra.mxu0 %v1976_v2  ;;  %v1590_v8 = vor.u32 %v1772_v6, %v1587_v7  ;;  %v1665_v6 = vld [vmem:[#allocation5 + $0x8] sm:$0xf] }
  0x53   :  { %684 = vmatmul.bf16.gmra.mxu1 %v1978_v5  ;;  %742 = vmatmul.bf16.gmra.mxu3 %v1976_v2  ;;  %v1029_v45 = vpack.c.b16 %v1021_v42, %v1021_v42 }
  0x54   :  { %961 = vmatpush.bf16.msra.mxu3 %v635_v20  ;;  %927 = vmatpush.bf16.msra.mxu1 %v1574_v19  ;;  %v1475_v19 = vld [vmem:[#allocation7 + $0x138] sm:$0xf0] }
  0x55   :  { %902 = vmatpush.bf16.msra.mxu0 %v1382_v61  ;;  %v1478_v20 = vor.u32 %v1744_v17, %v1475_v19  ;;  %v1056_v47 = vsel %vm1048_vm2, %v1029_v45, 0  ;;  %v1667_v61 = vld [vmem:[#allocation5 + $0x18] sm:$0xf0] }
  0x56   :  { %v1670_v63 = vor.u32 %v1692_v59, %v1667_v61 }
  0x58   :  { %928 = vmatpush.bf16.msra.mxu1 %v1558_v35  ;;  %962 = vmatpush.bf16.msra.mxu3 %v1606_v50  ;;  %v1022_v35 = vunpack.c.h.b16 %v82_v32 }
  0x59   :  { %903 = vmatpush.bf16.msra.mxu0 %v1366_v12 }
  0x5a   :  { %v1030_v37 = vpack.c.b16 %v1022_v35, %v1022_v35 }
  0x5c   :  { %929 = vmatpush.bf16.msra.mxu1 %v1542_v46  ;;  %963 = vmatpush.bf16.msra.mxu3 %v1590_v8  ;;  %v1059_v39 = vsel %vm1048_vm2, %v1030_v37, 0  ;;  %v1053_v46 = vsel %vm1048_vm2, %v1028_v43, 0  ;;  %v1687_v37 = vld [vmem:[%s2238_s0] sm:$0xff] }
  0x5d   :  { %904 = vmatpush.bf16.msra.mxu0 %v1350_v18 }
  0x60   :  { %930 = vmatpush.bf16.msra.mxu1 %v1526_v57  ;;  %v1657_v57 = vld [vmem:[#allocation5] sm:$0xf] }
  0x61   :  { %761 = vmatmul.bf16.vlgmr.msrb.gmra.mxu2 %v1955_v48  ;;  %905 = vmatpush.bf16.msra.mxu0 %v1334_v24  ;;  %v1658_v60 = vor.u32 %v1693_v58, %v1657_v57 }
  0x62   :  { %660 = vmatmul.bf16.gmra.mxu0 %v1987_v25  ;;  %1067 = vmatpush.bf16.msrb.mxu2 %v1050_v38 }
  0x63   :  { %689 = vmatmul.bf16.gmra.mxu1 %v1989_v27  ;;  %747 = vmatmul.bf16.gmra.mxu3 %v1987_v25 }
  0x64   :  { %931 = vmatpush.bf16.msra.mxu1 %v1510_v3 }
  0x66   :  { %1068 = vmatpush.bf16.msrb.mxu2 %v1658_v60 }
  0x68   :  { %932 = vmatpush.bf16.msra.mxu1 %v1494_v14 }
  0x6c   :  { %933 = vmatpush.bf16.msra.mxu1 %v1478_v20 }
  0x70   :  { %934 = vmatpush.bf16.msra.mxu1 %v1462_v29 }
  0x71   :  { %766 = vmatmul.bf16.gmra.mxu2 %v1967_v34 }
  0x72   :  { %1627 = vmatmul.msk.bf16.vlgmr.msrb.gmra.mxu0 %vm611_vm1, %v1947_v51 }
  0x73   :  { %819 = vmatmul.bf16.vlgmr.msrb.gmra.mxu1 %v1953_v44  ;;  %848 = vmatmul.bf16.vlgmr.msrb.gmra.mxu3 %v1955_v48 }
  0x74   :  { %1154 = vmatpush.bf16.msrb.mxu3 %v1059_v39  ;;  %1096 = vmatpush.bf16.msrb.mxu0 %v1053_v46 }
  0x75   :  { %1125 = vmatpush.bf16.msrb.mxu1 %v1056_v47 }
  0x78   :  { %1155 = vmatpush.bf16.msrb.mxu3 %v1670_v63 }
  0x81   :  { %771 = vmatmul.bf16.gmra.mxu2 %v1978_v5 }
  0x82   :  { %1628 = vmatmul.msk.bf16.gmra.mxu0 %vm611_vm1, %v1951_v40 }
  0x83   :  { %824 = vmatmul.bf16.gmra.mxu1 %v1965_v30  ;;  %853 = vmatmul.bf16.gmra.mxu3 %v1967_v34 }
  0x91   :  { %776 = vmatmul.bf16.gmra.mxu2 %v1989_v27 }
  0x92   :  { %1629 = vmatmul.msk.bf16.gmra.mxu0 %vm611_vm1, %v1963_v26 }
  0x93   :  { %829 = vmatmul.bf16.gmra.mxu1 %v1976_v2  ;;  %858 = vmatmul.bf16.gmra.mxu3 %v1978_v5 }
  0xa1   :  { %1631 = vmatmul.msk.bf16.vlgmr.msra.gmra.mxu2 %vm611_vm1, %v1947_v51 }
  0xa2   :  { %1630 = vmatmul.msk.bf16.gmra.mxu0 %vm611_vm1, %v1974_v1 }
  0xa3   :  { %834 = vmatmul.bf16.gmra.mxu1 %v1987_v25  ;;  %863 = vmatmul.bf16.gmra.mxu3 %v1989_v27 }
  0xa4   :  { %v704_v49 = vpop.f32.mrf.mxu2 }
  0xac   :  { %v706_v50 = vpop.f32.mrf.mxu2 }
  0xaf   :  { %v646_v52 = vpop.f32.mrf.mxu0 }
  0xb0   :  { %v675_v53 = vpop.f32.mrf.mxu1 }
  0xb1   :  { %v676_v54 = vadd.f32 %v675_v53, %v646_v52  ;;  %1632 = vmatmul.msk.bf16.gmra.mxu2 %vm611_vm1, %v1951_v40 }
  0xb2   :  { %906 = vmatmul.bf16.vlgmr.msra.gmra.mxu0 %v1953_v44 }
  0xb3   :  { %935 = vmatmul.bf16.vlgmr.msra.gmra.mxu1 %v1955_v48  ;;  %1635 = vmatmul.msk.bf16.vlgmr.msra.gmra.mxu3 %vm611_vm1, %v1947_v51  ;;  %v2022_v55 = vadd.f32 %v704_v49, %v676_v54  ;;  %v1659_v48 = vld [vmem:[#allocation5 + $0x10] sm:$0xf0]  ;;  %v1694_v51 = vld [vmem:[#allocation5 + $0x14] sm:$0xf0] }
  0xb4   :  { %v709_v56 = vpop.f32.mrf.mxu2  ;;  %v1662_v7 = vor.u32 %v1691_v4, %v1659_v48  ;;  %v1666_v8 = vor.u32 %v1694_v51, %v1665_v6 }
  0xb6   :  { %v733_v62 = vpop.f32.mrf.mxu3  ;;  %1097 = vmatpush.bf16.msrb.mxu0 %v1662_v7  ;;  %1126 = vmatpush.bf16.msrb.mxu1 %v1666_v8 }
  0xb7   :  { %v648_v0 = vpop.f32.mrf.mxu0 }
  0xb8   :  { %v677_v3 = vpop.f32.mrf.mxu1 }
  0xb9   :  { %v678_v44 = vadd.f32 %v677_v3, %v648_v0  ;;  %v1689_v3 = vld [vmem:[%s2238_s0 + $0x10] sm:$0xff] }
  0xbb   :  { %v2024_v9 = vadd.f32 %v706_v50, %v678_v44 }
  0xbc   :  { %v711_v10 = vpop.f32.mrf.mxu2 }
  0xbe   :  { %v735_v11 = vpop.f32.mrf.mxu3 }
  0xbf   :  { %v651_v12 = vpop.f32.mrf.mxu0 }
  0xc0   :  { %v680_v13 = vpop.f32.mrf.mxu1 }
  0xc1   :  { %v681_v14 = vadd.f32 %v680_v13, %v651_v12  ;;  %1633 = vmatmul.msk.bf16.gmra.mxu2 %vm611_vm1, %v1963_v26 }
  0xc2   :  { %911 = vmatmul.bf16.gmra.mxu0 %v1965_v30 }
  0xc3   :  { %940 = vmatmul.bf16.gmra.mxu1 %v1967_v34  ;;  %1636 = vmatmul.msk.bf16.gmra.mxu3 %vm611_vm1, %v1951_v40  ;;  %v2032_v15 = vadd.f32 %v709_v56, %v681_v14 }
  0xc4   :  { %v714_v16 = vpop.f32.mrf.mxu2 }
  0xc6   :  { %v738_v17 = vpop.f32.mrf.mxu3 }
  0xc7   :  { %v653_v18 = vpop.f32.mrf.mxu0 }
  0xc8   :  { %v682_v19 = vpop.f32.mrf.mxu1 }
  0xc9   :  { %v683_v20 = vadd.f32 %v682_v19, %v653_v18  ;;  %v1690_v18 = vld [vmem:[%s2238_s0 + $0x18] sm:$0xff] }
  0xcb   :  { %v2034_v21 = vadd.f32 %v711_v10, %v683_v20 }
  0xcc   :  { %v716_v22 = vpop.f32.mrf.mxu2 }
  0xce   :  { %v740_v23 = vpop.f32.mrf.mxu3 }
  0xcf   :  { %v656_v24 = vpop.f32.mrf.mxu0 }
  0xd0   :  { %v685_v28 = vpop.f32.mrf.mxu1 }
  0xd1   :  { %v686_v29 = vadd.f32 %v685_v28, %v656_v24  ;;  %1634 = vmatmul.msk.bf16.gmra.mxu2 %vm611_vm1, %v1974_v1 }
  0xd2   :  { %916 = vmatmul.bf16.gmra.mxu0 %v1976_v2 }
  0xd3   :  { %945 = vmatmul.bf16.gmra.mxu1 %v1978_v5  ;;  %1637 = vmatmul.msk.bf16.gmra.mxu3 %vm611_vm1, %v1963_v26  ;;  %v2042_v40 = vadd.f32 %v714_v16, %v686_v29 }
  0xd4   :  { %v719_v30 = vpop.f32.mrf.mxu2 }
  0xd6   :  { %v743_v34 = vpop.f32.mrf.mxu3 }
  0xd7   :  { %v658_v31 = vpop.f32.mrf.mxu0 }
  0xd8   :  { %v687_v32 = vpop.f32.mrf.mxu1 }
  0xd9   :  { %v688_v33 = vadd.f32 %v687_v32, %v658_v31 }
  0xdb   :  { %v2044_v35 = vadd.f32 %v716_v22, %v688_v33 }
  0xdc   :  { %v721_v36 = vpop.f32.mrf.mxu2 }
  0xde   :  { %v745_v2 = vpop.f32.mrf.mxu3 }
  0xdf   :  { %v661_v5 = vpop.f32.mrf.mxu0 }
  0xe0   :  { %v690_v38 = vpop.f32.mrf.mxu1 }
  0xe1   :  { %v691_v39 = vadd.f32 %v690_v38, %v661_v5  ;;  %1671 = vmatmul.msk.bf16.vlgmr.msrb.gmra.mxu2 %vm1035_vm3, %v1687_v37 }
  0xe2   :  { %921 = vmatmul.bf16.gmra.mxu0 %v1987_v25  ;;  %v1688_v25 = vld [vmem:[%s2238_s0 + $0x8] sm:$0xff] }
  0xe3   :  { %950 = vmatmul.bf16.gmra.mxu1 %v1989_v27  ;;  %1638 = vmatmul.msk.bf16.gmra.mxu3 %vm611_vm1, %v1974_v1  ;;  %v2054_v26 = vadd.f32 %v719_v30, %v691_v39 }
  0xe4   :  { %v762_v41 = vpop.f32.mrf.mxu2 }
  0xe5   :  { %v763_v42 = vadd.f32 %v762_v41, %v733_v62 }
  0xe6   :  { %v748_v43 = vpop.f32.mrf.mxu3 }
  0xe7   :  { %v663_v45 = vpop.f32.mrf.mxu0 }
  0xe8   :  { %v692_v46 = vpop.f32.mrf.mxu1 }
  0xe9   :  { %v693_v47 = vadd.f32 %v692_v46, %v663_v45 }
  0xeb   :  { %v2056_v49 = vadd.f32 %v721_v36, %v693_v47 }
  0xec   :  { %v764_v50 = vpop.f32.mrf.mxu2 }
  0xed   :  { %v765_v52 = vadd.f32 %v764_v50, %v735_v11 }
  0xee   :  { %v750_v27 = vpop.f32.mrf.mxu3 }
  0xef   :  { %v791_v53 = vpop.f32.mrf.mxu0 }
  0xf0   :  { %v2061_v54 = vadd.f32 %v791_v53, %v763_v42  ;;  %v820_v1 = vpop.f32.mrf.mxu1 }
  0xf1   :  { %1672 = vmatmul.msk.bf16.gmra.mxu2 %vm1035_vm3, %v1688_v25 }
  0xf2   :  { %1675 = vmatmul.msk.bf16.vlgmr.msrb.gmra.mxu0 %vm1035_vm3, %v1687_v37 }
  0xf3   :  { %1679 = vmatmul.msk.bf16.vlgmr.msrb.gmra.mxu1 %vm1035_vm3, %v1687_v37  ;;  %1683 = vmatmul.msk.bf16.vlgmr.msrb.gmra.mxu3 %vm1035_vm3, %v1687_v37 }
  0xf4   :  { %v767_v56 = vpop.f32.mrf.mxu2 }
  0xf5   :  { %v768_v57 = vadd.f32 %v767_v56, %v738_v17 }
  0xf6   :  { %v849_v58 = vpop.f32.mrf.mxu3 }
  0xf7   :  { %v850_v59 = vadd.f32 %v849_v58, %v820_v1  ;;  %v793_v60 = vpop.f32.mrf.mxu0 }
  0xf8   :  { %v2067_v61 = vadd.f32 %v793_v60, %v765_v52  ;;  %v822_v62 = vpop.f32.mrf.mxu1 }
  0xfc   :  { %v769_v63 = vpop.f32.mrf.mxu2 }
  0xfd   :  { %v770_v0 = vadd.f32 %v769_v63, %v740_v23 }
  0xfe   :  { %v851_v44 = vpop.f32.mrf.mxu3 }
  0xff   :  { %v852_v4 = vadd.f32 %v851_v44, %v822_v62  ;;  %v796_v48 = vpop.f32.mrf.mxu0 }
 0x100   :  { %v2072_v6 = vadd.f32 %v796_v48, %v768_v57  ;;  %v825_v7 = vpop.f32.mrf.mxu1 }
 0x101   :  { %1673 = vmatmul.msk.bf16.gmra.mxu2 %vm1035_vm3, %v1689_v3 }
 0x102   :  { %1676 = vmatmul.msk.bf16.gmra.mxu0 %vm1035_vm3, %v1688_v25 }
 0x103   :  { %1680 = vmatmul.msk.bf16.gmra.mxu1 %vm1035_vm3, %v1688_v25  ;;  %1684 = vmatmul.msk.bf16.gmra.mxu3 %vm1035_vm3, %v1688_v25 }
 0x104   :  { %v772_v51 = vpop.f32.mrf.mxu2 }
 0x105   :  { %v773_v8 = vadd.f32 %v772_v51, %v743_v34 }
 0x106   :  { %v854_v10 = vpop.f32.mrf.mxu3 }
 0x107   :  { %v855_v11 = vadd.f32 %v854_v10, %v825_v7  ;;  %v798_v12 = vpop.f32.mrf.mxu0 }
 0x108   :  { %v2078_v13 = vadd.f32 %v798_v12, %v770_v0  ;;  %v827_v14 = vpop.f32.mrf.mxu1 }
 0x10c   :  { %v774_v16 = vpop.f32.mrf.mxu2 }
 0x10d   :  { %v775_v17 = vadd.f32 %v774_v16, %v745_v2 }
 0x10e   :  { %v856_v19 = vpop.f32.mrf.mxu3 }
 0x10f   :  { %v857_v20 = vadd.f32 %v856_v19, %v827_v14  ;;  %v801_v22 = vpop.f32.mrf.mxu0 }
 0x110   :  { %v2083_v23 = vadd.f32 %v801_v22, %v773_v8  ;;  %v830_v24 = vpop.f32.mrf.mxu1 }
 0x111   :  { %1674 = vmatmul.msk.bf16.gmra.mxu2 %vm1035_vm3, %v1690_v18 }
 0x112   :  { %1677 = vmatmul.msk.bf16.gmra.mxu0 %vm1035_vm3, %v1689_v3 }
 0x113   :  { %1681 = vmatmul.msk.bf16.gmra.mxu1 %vm1035_vm3, %v1689_v3  ;;  %1685 = vmatmul.msk.bf16.gmra.mxu3 %vm1035_vm3, %v1689_v3 }
 0x114   :  { %v777_v28 = vpop.f32.mrf.mxu2 }
 0x115   :  { %v778_v29 = vadd.f32 %v777_v28, %v748_v43 }
 0x116   :  { %v859_v30 = vpop.f32.mrf.mxu3 }
 0x117   :  { %v860_v34 = vadd.f32 %v859_v30, %v830_v24  ;;  %v803_v31 = vpop.f32.mrf.mxu0 }
 0x118   :  { %v2089_v32 = vadd.f32 %v803_v31, %v775_v17  ;;  %v832_v33 = vpop.f32.mrf.mxu1 }
 0x11c   :  { %v779_v36 = vpop.f32.mrf.mxu2 }
 0x11d   :  { %v780_v37 = vadd.f32 %v779_v36, %v750_v27 }
 0x11e   :  { %v861_v2 = vpop.f32.mrf.mxu3 }
 0x11f   :  { %v862_v5 = vadd.f32 %v861_v2, %v832_v33  ;;  %v806_v38 = vpop.f32.mrf.mxu0 }
 0x120   :  { %v2091_v39 = vadd.f32 %v806_v38, %v778_v29  ;;  %v835_v41 = vpop.f32.mrf.mxu1  ;;  %v1177_v38 = vld [vmem:[%s2242_s4] sm:$0xf]  ;;  %s1900_s4 = smov [#allocation8]  }
 0x121   :  { %s1255_s18 = sshll.u32 %s1900_s4, 4  ;;  %s1256_s18 = int_to_ptr.vmem [resolvable:$true] %s1255_s18 }
 0x122   :  { %1678 = vmatmul.msk.bf16.gmra.mxu0 %vm1035_vm3, %v1690_v18 }
 0x123   :  { %1682 = vmatmul.msk.bf16.gmra.mxu1 %vm1035_vm3, %v1690_v18  ;;  %1686 = vmatmul.msk.bf16.gmra.mxu3 %vm1035_vm3, %v1690_v18 }
 0x124   :  { %v878_v42 = vpop.f32.mrf.mxu2 }
 0x125   :  { %v879_v43 = vadd.f32 %v878_v42, %v850_v59 }
 0x126   :  { %v864_v45 = vpop.f32.mrf.mxu3 }
 0x127   :  { %v865_v46 = vadd.f32 %v864_v45, %v835_v41  ;;  %v808_v47 = vpop.f32.mrf.mxu0  ;;  %v2150_v45 = vperm.slane %v1177_v38, 0 }
 0x128   :  { %v2096_v50 = vadd.f32 %v808_v47, %v780_v37  ;;  %v837_v52 = vpop.f32.mrf.mxu1  ;;  %v2154_v47 = vperm.slane %v1177_v38, 1 }
 0x12c   :  { %v880_v25 = vpop.f32.mrf.mxu2 }
 0x12d   :  { %v2098_v27 = vadd.f32 %v880_v25, %v852_v4 }
 0x12e   :  { %v866_v53 = vpop.f32.mrf.mxu3 }
 0x12f   :  { %v867_v1 = vadd.f32 %v866_v53, %v837_v52  ;;  %v907_v56 = vpop.f32.mrf.mxu0 }
 0x130   :  { %v936_v57 = vpop.f32.mrf.mxu1 }
 0x134   :  { %v883_v58 = vpop.f32.mrf.mxu2 }
 0x135   :  { %v2100_v60 = vadd.f32 %v883_v58, %v855_v11 }
 0x136   :  { %v965_v62 = vpop.f32.mrf.mxu3 }
 0x137   :  { %v909_v63 = vpop.f32.mrf.mxu0 }
 0x138   :  { %v938_v0 = vpop.f32.mrf.mxu1 }
 0x13c   :  { %v885_v59 = vpop.f32.mrf.mxu2 }
 0x13d   :  { %v2102_v3 = vadd.f32 %v885_v59, %v857_v20 }
 0x13e   :  { %v967_v44 = vpop.f32.mrf.mxu3 }
 0x13f   :  { %v2104_v48 = vpop.f32.mrf.mxu0 }
 0x140   :  { %v2106_v7 = vpop.f32.mrf.mxu1 }
 0x144   :  { %v888_v4 = vpop.f32.mrf.mxu2 }
 0x145   :  { %v2108_v51 = vadd.f32 %v888_v4, %v860_v34 }
 0x146   :  { %v2110_v8 = vpop.f32.mrf.mxu3 }
 0x147   :  { %v2112_v10 = vpop.f32.mrf.mxu0 }
 0x148   :  { %v2114_v11 = vpop.f32.mrf.mxu1 }
 0x14c   :  { %v890_v12 = vpop.f32.mrf.mxu2 }
 0x14d   :  { %v2116_v14 = vadd.f32 %v890_v12, %v862_v5 }
 0x14e   :  { %v2118_v16 = vpop.f32.mrf.mxu3 }
 0x14f   :  { %v2120_v17 = vpop.f32.mrf.mxu0 }
 0x150   :  { %v2122_v18 = vpop.f32.mrf.mxu1 }
 0x154   :  { %v893_v19 = vpop.f32.mrf.mxu2 }
 0x155   :  { %v2124_v20 = vadd.f32 %v893_v19, %v865_v46 }
 0x156   :  { %v2126_v22 = vpop.f32.mrf.mxu3 }
 0x157   :  { %v2128_v24 = vpop.f32.mrf.mxu0 }
 0x158   :  { %v2130_v28 = vpop.f32.mrf.mxu1 }
 0x15c   :  { %v895_v29 = vpop.f32.mrf.mxu2 }
 0x15d   :  { %v2132_v30 = vadd.f32 %v895_v29, %v867_v1  ;;  %v937_v1 = vadd.f32 %v936_v57, %v907_v56 }
 0x15e   :  { %v2134_v34 = vpop.f32.mrf.mxu3 }
 0x15f   :  { %2244 = vst [vmem:[#allocation12_spill] sm:$0xff] %v2132_v30  ;;  %v2136_v31 = vpop.f32.mrf.mxu0  ;;  %v966_v19 = vadd.f32 %v965_v62, %v937_v1 }
 0x160   :  { %v2138_v33 = vpop.f32.mrf.mxu1 }
 0x164   :  { %v1070_v36 = vpop.f32.mrf.mxu2 }
 0x165   :  { %v1071_v42 = vadd.f32 %v1070_v36, %v2022_v55  ;;  %v2159_v55 = vperm.slane %v1177_v38, 2  ;;  %v2161_v36 = vperm.slane %v1177_v38, 3 }
 0x166   :  { %v2140_v37 = vpop.f32.mrf.mxu3 }
 0x167   :  { %v2142_v2 = vpop.f32.mrf.mxu0  ;;  %v1187_v58 = vadd.f32 %v2150_v45, %v1071_v42 }
 0x168   :  { %v2144_v5 = vpop.f32.mrf.mxu1 }
 0x169   :  { %2245 = vst [vmem:[#allocation13_spill] sm:$0xff] %v2144_v5 }
 0x16c   :  { %v1072_v41 = vpop.f32.mrf.mxu2 }
 0x16d   :  { %v1073_v30 = vadd.f32 %v1072_v41, %v2024_v9 }
 0x16e   :  { %v2152_v46 = vpop.f32.mrf.mxu3 }
 0x16f   :  { %2246 = vst [vmem:[#allocation14_spill] sm:$0xff] %v2152_v46  ;;  %v1099_v52 = vpop.f32.mrf.mxu0  ;;  %v1191_v62 = vadd.f32 %v2150_v45, %v1073_v30  ;;  %v942_v30 = vadd.f32 %v2106_v7, %v2104_v48 }
 0x170   :  { %v1100_v25 = vadd.f32 %v1099_v52, %v2061_v54  ;;  %v1128_v53 = vpop.f32.mrf.mxu1 }
 0x171   :  { %v1129_v29 = vadd.f32 %v1128_v53, %v879_v43 }
 0x172   :  { %v1188_v59 = vadd.f32 %v2154_v47, %v1100_v25  ;;  %v939_v25 = vadd.f32 %v938_v0, %v909_v63 }
 0x173   :  { %v1189_v42 = vadd.f32 %v2159_v55, %v1129_v29 }
 0x174   :  { %v1219_v4 = vpack.c.bf16 %v1188_v59, %v1187_v58  ;;  %v1075_v12 = vpop.f32.mrf.mxu2  ;;  %v968_v9 = vadd.f32 %v967_v44, %v939_v25 }
 0x176   :  { %1235 = vst [vmem:[#allocation8] sm:$0xff] %v1219_v4  ;;  %v1157_v46 = vpop.f32.mrf.mxu3 }
 0x177   :  { %v1158_v5 = vadd.f32 %v1157_v46, %v966_v19  ;;  %v1101_v54 = vpop.f32.mrf.mxu0  ;;  %v1076_v46 = vadd.f32 %v1075_v12, %v2032_v15  ;;  %v971_v12 = vadd.f32 %v2110_v8, %v942_v30 }
 0x178   :  { %v1102_v56 = vadd.f32 %v1101_v54, %v2067_v61  ;;  %v1130_v57 = vpop.f32.mrf.mxu1 }
 0x179   :  { %v1190_v52 = vadd.f32 %v2161_v36, %v1158_v5  ;;  %v1131_v41 = vadd.f32 %v1130_v57, %v2098_v27  ;;  %v1195_v44 = vadd.f32 %v2150_v45, %v1076_v46 }
 0x17a   :  { %v1192_v43 = vadd.f32 %v2154_v47, %v1102_v56 }
 0x17b   :  { %v1220_v38 = vpack.c.bf16 %v1190_v52, %v1189_v42  ;;  %v1193_v63 = vadd.f32 %v2159_v55, %v1131_v41 }
 0x17c   :  { %v1221_v53 = vpack.c.bf16 %v1192_v43, %v1191_v62  ;;  %v1077_v1 = vpop.f32.mrf.mxu2 }
 0x17d   :  { %1236 = vst [vmem:[#allocation8 + $0x8] sm:$0xff] %v1220_v38  ;;  %v1078_v54 = vadd.f32 %v1077_v1, %v2034_v21 }
 0x17e   :  { %1237 = vst [vmem:[#allocation8 + $0x10] sm:$0xff] %v1221_v53  ;;  %v1159_v61 = vpop.f32.mrf.mxu3 }
 0x17f   :  { %v1160_v58 = vadd.f32 %v1159_v61, %v968_v9  ;;  %v1104_v59 = vpop.f32.mrf.mxu0  ;;  %v1199_v43 = vadd.f32 %v2150_v45, %v1078_v54 }
 0x180   :  { %v1105_v5 = vadd.f32 %v1104_v59, %v2072_v6  ;;  %v1133_v4 = vpop.f32.mrf.mxu1 }
 0x181   :  { %v1194_v0 = vadd.f32 %v2161_v36, %v1160_v58  ;;  %v1134_v29 = vadd.f32 %v1133_v4, %v2100_v60  ;;  %v944_v60 = vadd.f32 %v2114_v11, %v2112_v10  ;;  %v947_v10 = vadd.f32 %v2122_v18, %v2120_v17 }
 0x182   :  { %v1196_v27 = vadd.f32 %v2154_v47, %v1105_v5 }
 0x183   :  { %v1222_v19 = vpack.c.bf16 %v1194_v0, %v1193_v63  ;;  %v1197_v52 = vadd.f32 %v2159_v55, %v1134_v29  ;;  %v973_v38 = vadd.f32 %v2118_v16, %v944_v60  ;;  %v976_v4 = vadd.f32 %v2126_v22, %v947_v10 }
 0x184   :  { %v1223_v15 = vpack.c.bf16 %v1196_v27, %v1195_v44  ;;  %v1080_v6 = vpop.f32.mrf.mxu2 }
 0x185   :  { %1238 = vst [vmem:[#allocation8 + $0x18] sm:$0xff] %v1222_v19 }
 0x186   :  { %1239 = vst [vmem:[#allocation8 + $0x20] sm:$0xff] %v1223_v15  ;;  %v1162_v48 = vpop.f32.mrf.mxu3 }
 0x187   :  { %v1163_v7 = vadd.f32 %v1162_v48, %v971_v12  ;;  %v1106_v56 = vpop.f32.mrf.mxu0 }
 0x188   :  { %v1107_v57 = vadd.f32 %v1106_v56, %v2078_v13  ;;  %v1135_v42 = vpop.f32.mrf.mxu1  ;;  %v1081_v13 = vadd.f32 %v1080_v6, %v2042_v40 }
 0x189   :  { %v1198_v62 = vadd.f32 %v2161_v36, %v1163_v7  ;;  %v1136_v53 = vadd.f32 %v1135_v42, %v2102_v3 }
 0x18a   :  { %v1200_v8 = vadd.f32 %v2154_v47, %v1107_v57  ;;  %v1203_v59 = vadd.f32 %v2150_v45, %v1081_v13 }
 0x18b   :  { %v1224_v25 = vpack.c.bf16 %v1198_v62, %v1197_v52  ;;  %v1201_v11 = vadd.f32 %v2159_v55, %v1136_v53  ;;  %v952_v52 = vadd.f32 %v2138_v33, %v2136_v31 }
 0x18c   :  { %v1225_v21 = vpack.c.bf16 %v1200_v8, %v1199_v43  ;;  %v1082_v9 = vpop.f32.mrf.mxu2 }
 0x18d   :  { %1240 = vst [vmem:[#allocation8 + $0x28] sm:$0xff] %v1224_v25  ;;  %v981_v8 = vadd.f32 %v2140_v37, %v952_v52 }
 0x18e   :  { %1241 = vst [vmem:[#allocation8 + $0x30] sm:$0xff] %v1225_v21  ;;  %v1164_v1 = vpop.f32.mrf.mxu3 }
 0x18f   :  { %v1165_v41 = vadd.f32 %v1164_v1, %v973_v38  ;;  %v1109_v46 = vpop.f32.mrf.mxu0 }
 0x190   :  { %v1110_v61 = vadd.f32 %v1109_v46, %v2083_v23  ;;  %v1138_v58 = vpop.f32.mrf.mxu1  ;;  %v1083_v23 = vadd.f32 %v1082_v9, %v2044_v35  ;;  %v2247_v9 = vld [vmem:[#allocation13_spill] sm:$0xff]  ;;  %v2248_v46 = vld [vmem:[#allocation14_spill] sm:$0xff] }
 0x191   :  { %v1202_v16 = vadd.f32 %v2161_v36, %v1165_v41  ;;  %v1139_v30 = vadd.f32 %v1138_v58, %v2108_v51  ;;  %v949_v51 = vadd.f32 %v2130_v28, %v2128_v24  ;;  %v2249_v58 = vld [vmem:[#allocation12_spill] sm:$0xff] }
 0x192   :  { %v1204_v3 = vadd.f32 %v2154_v47, %v1110_v61  ;;  %v1207_v12 = vadd.f32 %v2150_v45, %v1083_v23 }
 0x193   :  { %v1226_v40 = vpack.c.bf16 %v1202_v16, %v1201_v11  ;;  %v1205_v27 = vadd.f32 %v2159_v55, %v1139_v30  ;;  %v978_v6 = vadd.f32 %v2134_v34, %v949_v51 }
 0x194   :  { %v1227_v5 = vpack.c.bf16 %v1204_v3, %v1203_v59  ;;  %v1085_v19 = vpop.f32.mrf.mxu2 }
 0x195   :  { %1242 = vst [vmem:[#allocation8 + $0x38] sm:$0xff] %v1226_v40  ;;  %v1086_v54 = vadd.f32 %v1085_v19, %v2054_v26 }
 0x196   :  { %1243 = vst [vmem:[#allocation8 + $0x40] sm:$0xff] %v1227_v5  ;;  %v1167_v63 = vpop.f32.mrf.mxu3 }
 0x197   :  { %v1168_v17 = vadd.f32 %v1167_v63, %v976_v4  ;;  %v1111_v18 = vpop.f32.mrf.mxu0  ;;  %v1211_v34 = vadd.f32 %v2150_v45, %v1086_v54 }
 0x198   :  { %v1112_v0 = vadd.f32 %v1111_v18, %v2089_v32  ;;  %v1140_v44 = vpop.f32.mrf.mxu1 }
 0x199   :  { %v1206_v15 = vadd.f32 %v2161_v36, %v1168_v17  ;;  %v1141_v32 = vadd.f32 %v1140_v44, %v2116_v14 }
 0x19a   :  { %v1208_v22 = vadd.f32 %v2154_v47, %v1112_v0 }
 0x19b   :  { %v1228_v35 = vpack.c.bf16 %v1206_v15, %v1205_v27  ;;  %v1209_v24 = vadd.f32 %v2159_v55, %v1141_v32 }
 0x19c   :  { %v1229_v29 = vpack.c.bf16 %v1208_v22, %v1207_v12  ;;  %v1087_v62 = vpop.f32.mrf.mxu2 }
 0x19d   :  { %1244 = vst [vmem:[#allocation8 + $0x48] sm:$0xff] %v1228_v35  ;;  %v1088_v60 = vadd.f32 %v1087_v62, %v2056_v49 }
 0x19e   :  { %1245 = vst [vmem:[#allocation8 + $0x50] sm:$0xff] %v1229_v29  ;;  %v1169_v48 = vpop.f32.mrf.mxu3 }
 0x19f   :  { %v1170_v7 = vadd.f32 %v1169_v48, %v978_v6  ;;  %v1114_v56 = vpop.f32.mrf.mxu0  ;;  %v1215_v13 = vadd.f32 %v2150_v45, %v1088_v60 }
 0x1a0   :  { %v1115_v57 = vadd.f32 %v1114_v56, %v2091_v39  ;;  %v1143_v42 = vpop.f32.mrf.mxu1 }
 0x1a1   :  { %v1210_v28 = vadd.f32 %v2161_v36, %v1170_v7  ;;  %v1144_v39 = vadd.f32 %v1143_v42, %v2124_v20  ;;  %v954_v20 = vadd.f32 %v2247_v9, %v2142_v2 }
 0x1a2   :  { %v1212_v14 = vadd.f32 %v2154_v47, %v1115_v57 }
 0x1a3   :  { %v1230_v26 = vpack.c.bf16 %v1210_v28, %v1209_v24  ;;  %v1213_v38 = vadd.f32 %v2159_v55, %v1144_v39  ;;  %v983_v61 = vadd.f32 %v2248_v46, %v954_v20 }
 0x1a4   :  { %v1231_v43 = vpack.c.bf16 %v1212_v14, %v1211_v34 }
 0x1a5   :  { %1246 = vst [vmem:[#allocation8 + $0x58] sm:$0xff] %v1230_v26 }
 0x1a6   :  { %1247 = vst [vmem:[#allocation8 + $0x60] sm:$0xff] %v1231_v43  ;;  %v1172_v31 = vpop.f32.mrf.mxu3 }
 0x1a7   :  { %v1173_v33 = vadd.f32 %v1172_v31, %v981_v8  ;;  %v1116_v25 = vpop.f32.mrf.mxu0 }
 0x1a8   :  { %v1117_v21 = vadd.f32 %v1116_v25, %v2096_v50  ;;  %v1145_v37 = vpop.f32.mrf.mxu1 }
 0x1a9   :  { %v1214_v53 = vadd.f32 %v2161_v36, %v1173_v33  ;;  %v1146_v10 = vadd.f32 %v1145_v37, %v2249_v58 }
 0x1aa   :  { %v1216_v1 = vadd.f32 %v2154_v47, %v1117_v21 }
 0x1ab   :  { %v1232_v41 = vpack.c.bf16 %v1214_v53, %v1213_v38  ;;  %v1217_v45 = vadd.f32 %v2159_v55, %v1146_v10 }
 0x1ac   :  { %v1233_v49 = vpack.c.bf16 %v1216_v1, %v1215_v13 }
 0x1ad   :  { %1248 = vst [vmem:[#allocation8 + $0x68] sm:$0xff] %v1232_v41 }
 0x1ae   :  { %1249 = vst [vmem:[#allocation8 + $0x70] sm:$0xff] %v1233_v49  ;;  %v1174_v50 = vpop.f32.mrf.mxu3 }
 0x1af   :  { %v1175_v11 = vadd.f32 %v1174_v50, %v983_v61 }
 0x1b1   :  { %v1218_v2 = vadd.f32 %v2161_v36, %v1175_v11 }
 0x1b3   :  { %v1234_v47 = vpack.c.bf16 %v1218_v2, %v1217_v45 }
 0x1b5   :  { %1250 = vst [vmem:[#allocation8 + $0x78] sm:$0xff] %v1234_v47 }
 0x1b6   :  { %1263 = dma.vmem_to_hbm [thread:$0]  %s1256_s18, 2048, %s1258_s21, [#allocation4], %s1894_s26, %s1894_s26, %s1895_s27  }
 0x1b7   :  { %1891 = dma.done.wait [#allocation4], 2048  }
 0x1b8   :  { %1892 = vsyncadd [#allocation4], 4294965248 }
 0x1b9   :  { %1268 = vsyncpa [#allocation3], 1 }
 0x1ba   :  { %1269 = vsyncpa [#allocation6], 1 }
 0x1bb   :  { %1270 = vsyncpa [#allocation4], 1 }

</bundles_post_ra>
